<compile_context>
chip_gen: v6e
topology: v6e:2x2x1
jax: 0.10.0
libtpu: 0.0.40
codegen_flags: <defaults>
</compile_context>

<pallas_src>
import functools

import jax
import jax.numpy as jnp
from jax.experimental import pallas as pl
from jax.experimental.pallas import tpu as pltpu


def _round_up(x, m):
    return (x + m - 1) // m * m


def _vmem_budget_bytes():
    # Cap any VMEM request at ~85% of the chip's *physical* capacity so a limit
    # that is fine on v5e/v6e (128 MiB) does not overshoot v7x (64 MiB per TC).
    try:
        cap = int(pltpu.get_tpu_info().vmem_capacity_bytes)
    except Exception:
        cap = 64 << 20  # conservative fallback: v7x per-TensorCore capacity
    return int(0.85 * cap)


def _working_set_bytes(tm, tk, e_pad, out_itemsize):
    # Double-buffered pipeline buffers + the resident f32 accumulator scratch.
    return (2 * tm * tk * 2                      # x tile (bf16)
            + 2 * tk * e_pad * 2                 # W tile (bf16)
            + 2 * 8 * e_pad * 4                  # bias tile (f32, sublane-padded)
            + 2 * tm * e_pad * out_itemsize      # output tile
            + tm * e_pad * 4)                    # f32 accumulator scratch


def _pick_tiles(n_rows_list, max_d, e_pad, out_itemsize, tm=None, tk=None):
    """Pick (tm, tk, d_pad).

    tm: per-grid-step overhead amortization is the real lever (the M dimension
    streams through the MXU, so MXU shape is irrelevant).  Bounded by the
    smallest per-type row count so tiny types don't drown in zero-row padding.
    tk: largest 128-multiple divisor of d_pad that is <= 512 (K tiling keeps
    the working set inside v7x's smaller VMEM while tm stays large).
    """
    if tm is None:
        smallest = max(min(max(int(n), 1) for n in n_rows_list), 8)
        tm = int(min(512, _round_up(smallest, 8)))
    tm = max(8, _round_up(int(tm), 8))

    d_pad = _round_up(max(int(max_d), 1), 128)
    if tk is None:
        if d_pad <= 512:
            tk = d_pad
        else:
            tk = 128
            for cand in range(512, 0, -128):
                if d_pad % cand == 0:
                    tk = cand
                    break
    tk = _round_up(max(int(tk), 128), 128)
    d_pad = _round_up(d_pad, tk)

    # VMEM guard: shrink tm (never the matmul dims) if the double-buffered
    # working set would not fit the chip's budget.
    budget = _vmem_budget_bytes()
    while (_working_set_bytes(tm, tk, e_pad, out_itemsize) + (2 << 20) > budget
           and tm > 8):
        tm = max(8, _round_up(tm // 2, 8))
    return tm, tk, d_pad


# ----------------------------------------------------------------------------
# Packing helpers (run once per model, NOT per forward)
# ----------------------------------------------------------------------------
def _pack_rows(h_list, tm, tk, d_pad):
    """Pack all node types into one row-tiled bf16 slab.

    Each type is padded to a whole number of tm-row tiles so a tile never
    straddles two types.  Returns per-tile type ids and per-tile K extents
    (number of tk-wide K blocks that actually contain this type's features).
    """
    x_blocks, tile_tids, tile_kbs, row_starts, n_rows = [], [], [], [], []
    total = 0
    for t, h in enumerate(h_list):
        n, d = int(h.shape[0]), int(h.shape[1])
        n_p = _round_up(max(n, 1), tm)
        xb = jnp.zeros((n_p, d_pad), dtype=jnp.bfloat16)
        if n > 0:
            xb = xb.at[:n, :d].set(h.astype(jnp.bfloat16))
        x_blocks.append(xb)
        row_starts.append(total)
        n_rows.append(n)
        kb = max(1, -(-d // tk))          # ceil(d / tk), at least 1
        n_tiles = n_p // tm
        tile_tids.extend([t] * n_tiles)
        tile_kbs.extend([kb] * n_tiles)
        total += n_p
    x = jnp.concatenate(x_blocks, axis=0)
    tids = jnp.asarray(tile_tids, dtype=jnp.int32)
    kbs = jnp.asarray(tile_kbs, dtype=jnp.int32)
    return x, tids, kbs, tuple(row_starts), tuple(n_rows), total


def _stack_params(w_list, b_list, d_pad, e_pad):
    num_types = len(w_list)
    w_stack = jnp.zeros((num_types, d_pad, e_pad), dtype=jnp.bfloat16)
    b_stack = jnp.zeros((num_types, 1, e_pad), dtype=jnp.float32)
    for t, (w, b) in enumerate(zip(w_list, b_list)):
        d, e = int(w.shape[0]), int(w.shape[1])
        w_stack = w_stack.at[t, :d, :e].set(w.astype(jnp.bfloat16))
        b_stack = b_stack.at[t, 0, :e].set(b.astype(jnp.float32))
    return w_stack, b_stack


# ----------------------------------------------------------------------------
# Fused per-type linear kernel: grid = (row tiles, K blocks)
# ----------------------------------------------------------------------------
def _fused_hetero_linear_kernel(tids_ref, kbs_ref, x_ref, w_ref, b_ref, o_ref,
                                acc_ref, *, apply_relu):
    # x_ref: (tm, tk) bf16      w_ref: (tk, e_pad) bf16 (type dim squeezed)
    # b_ref: (1, e_pad) f32     o_ref: (tm, e_pad) out_dtype
    # acc_ref: (tm, e_pad) f32 scratch, resident across the K axis
    k = pl.program_id(1)

    @pl.when(k == 0)
    def _init():
        acc_ref[...] = jnp.zeros_like(acc_ref)

    # Skip K blocks that lie entirely in this type's zero padding.
    @pl.when(k < kbs_ref[pl.program_id(0)])
    def _accumulate():
        acc_ref[...] += jnp.dot(x_ref[...], w_ref[...],
                                preferred_element_type=jnp.float32)

    @pl.when(k == pl.num_programs(1) - 1)
    def _finalize():
        y = acc_ref[...] + b_ref[...]
        if apply_relu:
            y = jnp.maximum(y, 0.0)
        o_ref[...] = y.astype(o_ref.dtype)


def _fused_hetero_linear_packed(x, tids, kbs, w_stack, b_stack, *, tm, tk,
                                fuse_relu, out_dtype):
    total, d_pad = int(x.shape[0]), int(x.shape[1])
    e_pad = int(w_stack.shape[2])
    num_tiles = total // tm
    num_k = d_pad // tk
    osz = jnp.dtype(out_dtype).itemsize

    cost = pl.CostEstimate(
        flops=2 * total * d_pad * e_pad,
        transcendentals=0,
        bytes_accessed=int(x.size * 2 + w_stack.size * 2 + b_stack.size * 4
                           + total * e_pad * osz))

    compiler_kwargs = dict(dimension_semantics=("parallel", "arbitrary"))
    need = _working_set_bytes(tm, tk, e_pad, osz) + (2 << 20)
    if need > (32 << 20):                      # scoped default on all gens
        compiler_kwargs["vmem_limit_bytes"] = int(min(need, _vmem_budget_bytes()))

    # K blocks beyond a type's extent are skipped in the kernel; clamping their
    # block index to the last valid block keeps the pipeline from re-DMAing
    # zero tiles (unchanged block index => no DMA).
    def x_map(i, k, tids, kbs):
        return (i, jnp.minimum(k, kbs[i] - 1))

    def w_map(i, k, tids, kbs):
        return (tids[i], jnp.minimum(k, kbs[i] - 1), 0)

    def b_map(i, k, tids, kbs):
        return (tids[i], 0, 0)

    def o_map(i, k, tids, kbs):
        return (i, 0)

    kernel = functools.partial(_fused_hetero_linear_kernel, apply_relu=fuse_relu)
    return pl.pallas_call(
        kernel,
        out_shape=jax.ShapeDtypeStruct((total, e_pad), out_dtype),
        grid_spec=pltpu.PrefetchScalarGridSpec(
            num_scalar_prefetch=2,
            grid=(num_tiles, num_k),
            in_specs=[
                pl.BlockSpec((tm, tk), x_map),                        # rows
                pl.BlockSpec((pl.Squeezed(), tk, e_pad), w_map),      # W[type]
                pl.BlockSpec((pl.Squeezed(), 1, e_pad), b_map),       # b[type]
            ],
            out_specs=pl.BlockSpec((tm, e_pad), o_map),
            scratch_shapes=[pltpu.VMEM((tm, e_pad), jnp.float32)],
        ),
        compiler_params=pltpu.CompilerParams(**compiler_kwargs),
        cost_estimate=cost,
    )(tids, kbs, x, w_stack, b_stack)


def fused_hetero_linear(h_list, w_list, b_list, *, fuse_relu=False, tm=None,
                        tk=None, out_dtype=jnp.bfloat16):
    """One-shot convenience wrapper: act(h_t @ W_t + b_t) for every type t in
    a single pallas_call.  (The class below caches the packing instead.)"""
    e = int(w_list[0].shape[1])
    e_pad = _round_up(e, 128)
    osz = jnp.dtype(out_dtype).itemsize
    max_d = max(int(h.shape[1]) for h in h_list)
    tm, tk, d_pad = _pick_tiles([int(h.shape[0]) for h in h_list], max_d,
                                e_pad, osz, tm=tm, tk=tk)
    x, tids, kbs, row_starts, n_rows, _ = _pack_rows(h_list, tm, tk, d_pad)
    w_stack, b_stack = _stack_params(w_list, b_list, d_pad, e_pad)
    out = _fused_hetero_linear_packed(x, tids, kbs, w_stack, b_stack, tm=tm,
                                      tk=tk, fuse_relu=fuse_relu,
                                      out_dtype=out_dtype)
    if e_pad == e:
        return [out[row_starts[t]:row_starts[t] + n_rows[t]]
                for t in range(len(h_list))]
    return [out[row_starts[t]:row_starts[t] + n_rows[t], :e]
            for t in range(len(h_list))]


# ----------------------------------------------------------------------------
# HeteroFeature (forward only) in JAX, fused Pallas hot path
# ----------------------------------------------------------------------------
class HeteroFeatureJAX:
    def __init__(self, h_dict, n_nodes_dict, embed_size, act=None,
                 need_trans=True, all_feats=True, seed=0,
                 out_dtype=jnp.bfloat16, tm=None, tk=None):
        # out_dtype: bf16 by default (kernel is memory-bound; MXU still
        # accumulates in f32).  Pass jnp.float32 to match PyTorch exactly.
        self.h_dict = h_dict
        self.n_nodes_dict = n_nodes_dict
        self.embed_size = embed_size
        self.act = act
        self.need_trans = need_trans

        key = jax.random.PRNGKey(seed)
        self.embed_dict = {}   # ntype -> [n_nodes, embed_size] embedding table
        self.linear_w = {}     # ntype -> [in_dim, embed_size]
        self.linear_b = {}     # ntype -> [embed_size]
        self.feat_types = []   # node types that have original features

        for ntype, n_nodes in n_nodes_dict.items():
            h = h_dict.get(ntype)
            if h is None:
                if all_feats:
                    key, sub = jax.random.split(key)
                    self.embed_dict[ntype] = (
                        0.1 * jax.random.normal(sub, (n_nodes, embed_size),
                                                dtype=jnp.float32))
            else:
                in_dim = int(h.shape[1])
                key, kw, kb = jax.random.split(key, 3)
                self.linear_w[ntype] = (
                    jax.random.normal(kw, (in_dim, embed_size),
                                      dtype=jnp.float32) / jnp.sqrt(in_dim))
                self.linear_b[ntype] = (
                    0.01 * jax.random.normal(kb, (embed_size,),
                                             dtype=jnp.float32))
                self.feat_types.append(ntype)

        self._linear_fwd = None
        if self.need_trans and self.feat_types:
            e = int(embed_size)
            e_pad = _round_up(e, 128)
            osz = jnp.dtype(out_dtype).itemsize
            h_list = [h_dict[t] for t in self.feat_types]
            max_d = max(int(h.shape[1]) for h in h_list)
            tm, tk, d_pad = _pick_tiles([int(h.shape[0]) for h in h_list],
                                        max_d, e_pad, osz, tm=tm, tk=tk)

            # Pack the (static) node features ONCE; store stacked/padded
            # parameters so forward() pays no repacking / scatter cost.
            (self._x, self._tids, self._kbs,
             row_starts, n_rows, _) = _pack_rows(h_list, tm, tk, d_pad)
            self._w_stack, self._b_stack = _stack_params(
                [self.linear_w[t] for t in self.feat_types],
                [self.linear_b[t] for t in self.feat_types], d_pad, e_pad)

            fuse_relu = (act == "relu") or (act is jax.nn.relu)
            post_act = act if (callable(act) and not fuse_relu) else None

            def _fwd(x, tids, kbs, w_stack, b_stack):
                out = _fused_hetero_linear_packed(
                    x, tids, kbs, w_stack, b_stack, tm=tm, tk=tk,
                    fuse_relu=fuse_relu, out_dtype=out_dtype)
                outs = []
                for rs, n in zip(row_starts, n_rows):
                    o = out[rs:rs + n] if e_pad == e else out[rs:rs + n, :e]
                    if post_act is not None:
                        o = post_act(o)
                    outs.append(o)
                return tuple(outs)

            # One jit over kernel + per-type slices so the crops stay fused
            # on-device with the kernel output.
            self._linear_fwd = jax.jit(_fwd)

    def forward(self):
        out_dict = {}
        # 1) embedding tables for node types without features (no compute)
        out_dict.update(self.embed_dict)
        # 2) fused per-type linear transform (single Pallas call)
        if self._linear_fwd is not None:
            outs = self._linear_fwd(self._x, self._tids, self._kbs,
                                    self._w_stack, self._b_stack)
            for t, o in zip(self.feat_types, outs):
                out_dict[t] = o
        return out_dict

    # TODO(synk): forward_nodes (per-id gather + type routing) is host-side
    # bookkeeping in the original module and is not implemented here.


# ----------------------------------------------------------------------------
# Demo / self-check
# ----------------------------------------------------------------------------
if __name__ == "__main__":
    key = jax.random.PRNGKey(0)
    embed_size = 128   # multiple of 128 -> lane-dense output, no lane crop

    # "paper" and "author" have original features; "venue" gets an embedding.
    n_nodes_dict = {"paper": 64, "author": 48, "venue": 40}
    k1, k2 = jax.random.split(key)
    h_dict = {
        "paper": jax.random.normal(k1, (64, 200), dtype=jnp.float32),
        "author": jax.random.normal(k2, (48, 16), dtype=jnp.float32),
        "venue": None,
    }

    model = HeteroFeatureJAX(h_dict, n_nodes_dict, embed_size,
                             act=None, need_trans=True, all_feats=True)
    out = model.forward()
    jax.block_until_ready(out)

    # Reference uses the same bf16-operand / f32-accumulate arithmetic.
    def ref_linear(h, w, b):
        return jnp.dot(h.astype(jnp.bfloat16), w.astype(jnp.bfloat16),
                       preferred_element_type=jnp.float32) + b

    for ntype in ("paper", "author"):
        ref = ref_linear(h_dict[ntype], model.linear_w[ntype],
                         model.linear_b[ntype])
        got = out[ntype].astype(jnp.float32)
        assert out[ntype].shape == (n_nodes_dict[ntype], embed_size), ntype
        assert jnp.allclose(got, ref, atol=5e-2, rtol=5e-2), (
            ntype, float(jnp.max(jnp.abs(got - ref))))

    assert out["venue"].shape == (40, embed_size)
    assert jnp.allclose(out["venue"], model.embed_dict["venue"])

    # Exercise the K-tiled path explicitly: tk=128 -> "paper" (D=200) spans
    # 2 K blocks, "author" (D=16) spans 1 and skips the second via pl.when.
    outs_k = fused_hetero_linear(
        [h_dict["paper"], h_dict["author"]],
        [model.linear_w["paper"], model.linear_w["author"]],
        [model.linear_b["paper"], model.linear_b["author"]],
        fuse_relu=False, tk=128, out_dtype=jnp.float32)
    jax.block_until_ready(outs_k)
    for o, ntype in zip(outs_k, ("paper", "author")):
        ref = ref_linear(h_dict[ntype], model.linear_w[ntype],
                         model.linear_b[ntype])
        assert o.shape == (n_nodes_dict[ntype], embed_size), ntype
        assert jnp.allclose(o, ref, atol=5e-2, rtol=5e-2), ntype

    print("KERNEL_OK")
</pallas_src>

<mosaic_0001>
module attributes {stable_mosaic.version = 11 : i64} {
  func.func @_fused_hetero_linear_kernel(%arg0: i32, %arg1: i32, %arg2: memref<3xi32, #tpu.memory_space<smem>>, %arg3: memref<3xi32, #tpu.memory_space<smem>>, %arg4: memref<48x256xbf16, #tpu.memory_space<vmem>>, %arg5: memref<1x256x128xbf16, #tpu.memory_space<vmem>>, %arg6: memref<1x1x128xf32, #tpu.memory_space<vmem>>, %arg7: memref<48x128xbf16, #tpu.memory_space<vmem>>, %arg8: memref<48x128xf32, #tpu.memory_space<vmem>>) attributes {dimension_semantics = [#tpu.dimension_semantics<parallel>, #tpu.dimension_semantics<arbitrary>], iteration_bounds = array<i64: 3, 1>, scalar_prefetch = 2 : i64, scratch_operands = 1 : i64, tpu.core_type = #tpu.core_type<tc>, window_params = [{transform_indices = @transform_0, window_bounds = array<i64: 48, 256>}, {transform_indices = @transform_1, window_bounds = array<i64: 1, 256, 128>}, {transform_indices = @transform_2, window_bounds = array<i64: 1, 1, 128>}, {transform_indices = @transform_3, window_bounds = array<i64: 48, 128>}]} {
    %c0_i32 = arith.constant 0 : i32
    %0 = arith.cmpi eq, %arg1, %c0_i32 : i32
    %1 = arith.extui %0 : i1 to i32
    %c0_i32_0 = arith.constant 0 : i32
    %2 = arith.cmpi ne, %1, %c0_i32_0 : i32
    scf.if %2 {
      %cst = arith.constant 0.000000e+00 : f32
      %11 = vector.broadcast %cst : f32 to vector<48x128xf32>
      %c0 = arith.constant 0 : index
      %c0_4 = arith.constant 0 : index
      %12 = vector.load %arg8[%c0, %c0_4] : memref<48x128xf32, #tpu.memory_space<vmem>>, vector<48x128xf32>
      tpu.vector_store %arg8[%c0, %c0_4], %11 {strides = array<i32>} : memref<48x128xf32, #tpu.memory_space<vmem>>, vector<48x128xf32>,
    } else {
    }
    %3 = arith.index_cast %arg0 : i32 to index
    %4 = memref.load %arg3[%3] : memref<3xi32, #tpu.memory_space<smem>>
    %5 = arith.cmpi slt, %arg1, %4 : i32
    %6 = arith.extui %5 : i1 to i32
    %c0_i32_1 = arith.constant 0 : i32
    %7 = arith.cmpi ne, %6, %c0_i32_1 : i32
    scf.if %7 {
      %c0 = arith.constant 0 : index
      %c0_4 = arith.constant 0 : index
      %11 = vector.load %arg8[%c0, %c0_4] : memref<48x128xf32, #tpu.memory_space<vmem>>, vector<48x128xf32>
      %c0_5 = arith.constant 0 : index
      %c0_6 = arith.constant 0 : index
      %12 = vector.load %arg4[%c0_5, %c0_6] : memref<48x256xbf16, #tpu.memory_space<vmem>>, vector<48x256xbf16>
      %c0_7 = arith.constant 0 : index
      %c0_8 = arith.constant 0 : index
      %c0_9 = arith.constant 0 : index
      %13 = vector.load %arg5[%c0_7, %c0_8, %c0_9] : memref<1x256x128xbf16, #tpu.memory_space<vmem>>, vector<1x256x128xbf16>
      %14 = vector.shape_cast %13 : vector<1x256x128xbf16> to vector<256x128xbf16>
      %cst = arith.constant dense<0.000000e+00> : vector<48x128xf32>
      %15 = tpu.matmul %12, %14, %cst {dimension_numbers = #tpu.dot_dimension_numbers<[1], [0], [0], [1], [0, 0, 1, 1], [], []>} : vector<48x256xbf16>, vector<256x128xbf16>, vector<48x128xf32> -> vector<48x128xf32>
      %16 = arith.addf %11, %15 : vector<48x128xf32>
      %c0_10 = arith.constant 0 : index
      %c0_11 = arith.constant 0 : index
      %17 = vector.load %arg8[%c0_10, %c0_11] : memref<48x128xf32, #tpu.memory_space<vmem>>, vector<48x128xf32>
      tpu.vector_store %arg8[%c0_10, %c0_11], %16 {strides = array<i32>} : memref<48x128xf32, #tpu.memory_space<vmem>>, vector<48x128xf32>,
    } else {
    }
    %c0_i32_2 = arith.constant 0 : i32
    %8 = arith.cmpi eq, %arg1, %c0_i32_2 : i32
    %9 = arith.extui %8 : i1 to i32
    %c0_i32_3 = arith.constant 0 : i32
    %10 = arith.cmpi ne, %9, %c0_i32_3 : i32
    scf.if %10 {
      %c0 = arith.constant 0 : index
      %c0_4 = arith.constant 0 : index
      %11 = vector.load %arg8[%c0, %c0_4] : memref<48x128xf32, #tpu.memory_space<vmem>>, vector<48x128xf32>
      %c0_5 = arith.constant 0 : index
      %c0_6 = arith.constant 0 : index
      %c0_7 = arith.constant 0 : index
      %12 = vector.load %arg6[%c0_5, %c0_6, %c0_7] : memref<1x1x128xf32, #tpu.memory_space<vmem>>, vector<1x1x128xf32>
      %13 = vector.shape_cast %12 : vector<1x1x128xf32> to vector<1x128xf32>
      %14 = vector.broadcast %13 : vector<1x128xf32> to vector<48x128xf32>
      %15 = arith.addf %11, %14 : vector<48x128xf32>
      %16 = arith.truncf %15 : vector<48x128xf32> to vector<48x128xbf16>
      %c0_8 = arith.constant 0 : index
      %c0_9 = arith.constant 0 : index
      %17 = vector.load %arg7[%c0_8, %c0_9] : memref<48x128xbf16, #tpu.memory_space<vmem>>, vector<48x128xbf16>
      tpu.vector_store %arg7[%c0_8, %c0_9], %16 {strides = array<i32>} : memref<48x128xbf16, #tpu.memory_space<vmem>>, vector<48x128xbf16>,
    } else {
    }
    return
  }
  func.func @transform_0(%arg0: i32, %arg1: i32, %arg2: memref<3xi32, #tpu.memory_space<smem>>, %arg3: memref<3xi32, #tpu.memory_space<smem>>) -> (i32, i32) {
    %0 = arith.index_cast %arg0 : i32 to index
    %1 = memref.load %arg3[%0] : memref<3xi32, #tpu.memory_space<smem>>
    %c1_i32 = arith.constant 1 : i32
    %2 = arith.subi %1, %c1_i32 : i32
    %3 = arith.minsi %arg1, %2 : i32
    %c0_i32 = arith.constant 0 : i32
    return %arg0, %3 : i32, i32
  }
  func.func @transform_1(%arg0: i32, %arg1: i32, %arg2: memref<3xi32, #tpu.memory_space<smem>>, %arg3: memref<3xi32, #tpu.memory_space<smem>>) -> (i32, i32, i32) {
    %0 = arith.index_cast %arg0 : i32 to index
    %1 = memref.load %arg2[%0] : memref<3xi32, #tpu.memory_space<smem>>
    %2 = arith.index_cast %arg0 : i32 to index
    %3 = memref.load %arg3[%2] : memref<3xi32, #tpu.memory_space<smem>>
    %c1_i32 = arith.constant 1 : i32
    %4 = arith.subi %3, %c1_i32 : i32
    %5 = arith.minsi %arg1, %4 : i32
    %c0_i32 = arith.constant 0 : i32
    %c0_i32_0 = arith.constant 0 : i32
    return %1, %5, %c0_i32 : i32, i32, i32
  }
  func.func @transform_2(%arg0: i32, %arg1: i32, %arg2: memref<3xi32, #tpu.memory_space<smem>>, %arg3: memref<3xi32, #tpu.memory_space<smem>>) -> (i32, i32, i32) {
    %0 = arith.index_cast %arg0 : i32 to index
    %1 = memref.load %arg2[%0] : memref<3xi32, #tpu.memory_space<smem>>
    %c0_i32 = arith.constant 0 : i32
    %c0_i32_0 = arith.constant 0 : i32
    %c0_i32_1 = arith.constant 0 : i32
    return %1, %c0_i32, %c0_i32_0 : i32, i32, i32
  }
  func.func @transform_3(%arg0: i32, %arg1: i32, %arg2: memref<3xi32, #tpu.memory_space<smem>>, %arg3: memref<3xi32, #tpu.memory_space<smem>>) -> (i32, i32) {
    %c0_i32 = arith.constant 0 : i32
    %c0_i32_0 = arith.constant 0 : i32
    return %arg0, %c0_i32 : i32, i32
  }
}

</mosaic_0001>

<bundles_post_ra>
// kernel: _fwd.1
= control target key start
LH: loop header
LB: loop body
LE: loop exit
PB: predicated region body
PF: predicated region fallthrough
CT: control target
= control target key end

     0   :  { %s1521_s0 = inlined_call_operand.vmem [shape: s32[3], index: 0, kind: input, shape index: {}]   ;;  %s1522_s2 = inlined_call_operand.hbm [shape: bf16[144,256], index: 2, kind: input, shape index: {}]   ;;  %s1523_s3 = inlined_call_operand.hbm [shape: bf16[2,256,128], index: 3, kind: input, shape index: {}]   ;;  %s1524_s4 = inlined_call_operand.vmem [shape: f32[2,1,128], index: 4, kind: input, shape index: {}]   ;;  %s1525_s5 = inlined_call_operand.vmem [shape: bf16[144,128], index: 5, kind: output, shape index: {}]   ;;  %s1526_s1 = inlined_call_operand.hbm [shape: s32[3], index: 1, kind: input, shape index: {}]  }
   0x1   :  { %1535 = sst [smem:[#allocation21_spill]] %s1524_s4  ;;  %s10_s20 = sshll.u32 %s1521_s0, 4  ;;  %s11_s20 = int_to_ptr.vmem [resolvable:$true] %s10_s20 }
   0x2   :  { %1536 = sst [smem:[#allocation22_spill]] %s1525_s5  ;;  %s1007_s21 = scalar_lea.vmem %s11_s20, 16 }
   0x3   :  { %p1008_p0 = scmp.ne.s32.totalorder %s11_s20, %s1007_s21  ;;  %p1012_p1 = scmp.lt.s32.totalorder %s11_s20, %s11_s20 }
   0x4   :  { %p1013_p2 = scmp.lt.s32.totalorder %s1007_s21, %s1007_s21 }
   0x6   :  { %p1014_p3 = por %p1013_p2, %p1012_p1 }
   0x8   :  { %p1015_p4 = pnand %p1014_p3, %p1008_p0 }
   0xa   :  { %1018 = shalt.err (!%p1015_p4)  }
   0xb   :  { %s1165_s22 = smov [#allocation4]   ;;  %s1166_s23 = smov [#allocation5]  }
   0xc   :  { %13 = dma.vmem_to_smem %s11_s20, 16, %s1165_s22, [#allocation3] }
   0xd   :  { %15 = dma.hbm_to_smem %s1526_s1, 16, %s1166_s23, [#allocation3] }
   0xe   :  { %1119 = dma.done.wait [#allocation3], 32 }
   0xf   :  { %1120 = vsyncadd [#allocation3], 4294967264 }
  0x10   :  { %17 = sfence }
  0x11   :  { %18 = vsyncpa [#allocation7], 0 }
  0x12   :  { %20 = vsyncpa [#allocation7 + $0x1], 0 }
  0x13   :  { %21 = vsyncpa [#allocation9], 0 }
  0x14   :  { %23 = vsyncpa [#allocation9 + $0x1], 0  ;;  %s1210_s0 = smov 0   ;;  %s1212_s26 = smov 0  }
  0x15   :  { %s1214_s27 = smov 0   ;;  %s1216_s28 = smov 0  }
  0x16   :  { %s1218_s29 = smov 0   ;;  %s1220_s30 = smov 0  }
  0x17   :  { %s1222_s1 = smov 0   ;;  %s1224_s6 = smov 0  }
  0x18   :  { %s1226_s7 = smov 0  }
  0x19 LB: > { %s41_s8 = sadd.s32 1, %s1159_s6  ;;  %s45_s9 = sld [smem:[#allocation5 + %s1159_s6]]  ;;  %s1163_s7 = sphi %s1226_s7, %s29_s7   ;;  %s1159_s6 = sphi %s1224_s6, %s1574_s6   ;;  %s1155_s1 = sphi %s1222_s1, %s1573_s1   ;;  %s1151_s30 = sphi %s1220_s30, %s1572_s30   ;;  %s1147_s29 = sphi %s1218_s29, %s1571_s29   ;;  %s1143_s28 = sphi %s1216_s28, %s1570_s28   ;;  %s1139_s27 = sphi %s1214_s27, %s1569_s27   ;;  %s1135_s26 = sphi %s1212_s26, %s1568_s26   ;;  %s1131_s0 = sphi %s1210_s0, %s1567_s0  }
  0x1a   : > { %p43_p5 = scmp.ge.s32.totalorder %s41_s8, 3  ;;  %s744_s10 = sadd.s32 4294967295, %s1163_s7  }
  0x1b   : > { %p71_p6 = scmp.ne.s32.totalorder %s1147_s29, %s1143_s28  ;;  %p65_p7 = scmp.ne.s32.totalorder %s1151_s30, %s1147_s29 }
  0x1c   : > { %s1576_s8 = smov (%p43_p5, %s41_s8), 0  ;;  %p1531_p8 = scmp.eq.s32.totalorder %s1163_s7, 0 }
  0x1d   : > { %1537 = sst [smem:[#allocation19_spill]] %s1576_s8  ;;  %p1263_p9 = scmp.eq.s32.totalorder %s744_s10, 0 }
  0x1e   : > { %s49_s11 = sld [smem:[#allocation5 + %s1576_s8]]  ;;  %s58_s15 = sadd.s32 1, %s1151_s30 }
  0x1f   : > { %s1538_s12 = scalar_select %p1263_p9, 1, 0 }
  0x20   : > { %s746_s13 = sadd.s32 4294967295, %s45_s9  ;;  %p1269_p11 = por %p1263_p9, %p71_p6 }
  0x21   : > { %p747_p10 = scmp.gt.s32.totalorder %s746_s13, 0  ;;  %s1527_s16 = sand.u32 1, %s1151_s30  }
  0x22   : > { %s1539_s14 = scalar_select %p1269_p11, 1, 0 }
  0x23   : > { %s1578_s13 = smov (%p747_p10, %s746_s13), 0  ;;  %p1277_p12 = por %p1531_p8, %p65_p7 }
  0x24   : > { %s748_s17 = sadd.s32 4294967295, %s49_s11  ;;  %s53_s19 = ssub.s32 %s1159_s6, %s1576_s8 }
  0x25   : > { %p749_p13 = scmp.gt.s32.totalorder %s748_s17, 0  ;;  %p1530_p0 = scmp.lt.s32.totalorder %s1163_s7, 3 }
  0x26   : > { %s877_s20 = smul.u32 48, %s1527_s16  ;;  %p767_p3 = scmp.ge.s32.totalorder %s1163_s7, 1 }
  0x27   : > { %s1580_s17 = smov (%p749_p13, %s748_s17), 0  ;;  %p1292_p2 = pnand %p1530_p0, %p1277_p12 }
  0x28   : > { %s879_s21 = scalar_select %p1277_p12, [#allocation5], [#allocation10] }
  0x29   : > { %s54_s22 = ssub.s32 %s1578_s13, %s1580_s17  ;;  %s191_s9 = scalar_lea.vmem [#allocation6], %s877_s20 }
  0x2a   : > { %s55_s23 = sor.u32 %s54_s22, %s53_s19  ;;  %s1582_s21 = smov (!%p1530_p0, %s879_s21), [#allocation13] }
  0x2b   : > { %p56_p1 = scmp.eq.s32.totalorder %s55_s23, 0  ;;  %s205_s10 = sshll.u32 %s191_s9, 4  ;;  %s1309_s10 = int_to_ptr.vmem [resolvable:$true] %s205_s10 }
  0x2c   : > { %s880_s25 = scalar_select %p1277_p12, %s1159_s6, 0 }
  0x2d   : > { %s1300_s28 = scalar_select %p56_p1, %s1151_s30, %s58_s15  }
  0x2e   : > { %s1584_s25 = smov (!%p1530_p0, %s880_s25), 0  ;;  %s803_s13 = smul.u32 12, %s1159_s6 }
  0x2f   : > { %1542 = sst [smem:[#allocation20_spill]] %s1300_s28  ;;  %p249_p4 = scmp.lt.s32.totalorder %s1163_s7, 4 }
  0x30   : > { %s192_s11 = sld [smem:[%s1582_s21 + %s1584_s25]]  ;;  %s1545_s5 = sand.u32 1, %s1151_s30  }
  0x31   : > { %p1311_p5 = pnand %p767_p3, %p249_p4  ;;  %s1316_s18 = sld [smem:[#allocation5 + %s1159_s6]] }
  0x32   : > { %s1319_s19 = sld [smem:[#allocation4 + %s1159_s6]]  ;;  %p1029_p13 = pneg %p1292_p2 }
  0x33   : > { %s1543_s17 = scalar_select %p1311_p5, 1, 0 }
  0x34   : > { %s1322_s20 = sld [smem:[#allocation5 + %s1576_s8]] }
  0x35   : > { %s1325_s21 = sld [smem:[#allocation4 + %s1576_s8]] }
  0x36   : > { %s756_s15 = sadd.s32 4294967295, %s192_s11 }
  0x37   : > { %p757_p6 = scmp.gt.s32.totalorder %s756_s15, 0  ;;  %s1529_s25 = sadd.s32 4294967295, %s1316_s18 }
  0x38   : > { %p1332_p10 = scmp.gt.s32.totalorder %s1529_s25, 0  ;;  %s1032_s25 = scalar_lea.hbm %s1522_s2, 2304 }
  0x39   : > { %s1586_s15 = smov (%p757_p6, %s756_s15), 0 }
  0x3a   : > { %s758_s22 = sshll.u32 %s1586_s15, 1  ;;  %s1344_s15 = scalar_lea.sflag [#allocation7], %s1545_s5 }
  0x3b   : > { %s202_s23 = sadd.s32 %s803_s13, %s758_s22 }
  0x3c   : > { %s760_s9 = sshll.u32 %s202_s23, 6 }
  0x3d   : > { %s1544_s11 = scalar_select %p1332_p10, 1, 0 }
  0x3e   : > { %s1339_s4 = scalar_lea.hbm %s1522_s2, %s760_s9 }
  0x3f   : > { %s1027_s13 = scalar_lea.hbm %s1339_s4, 768  ;;  %p1033_p4 = scmp.lt.s32.totalorder %s1339_s4, %s1522_s2 }
  0x40   : > { %p1028_p12 = scmp.ne.s32.totalorder %s1339_s4, %s1027_s13  ;;  %p1034_p6 = scmp.lt.s32.totalorder %s1032_s25, %s1027_s13 }
  0x42   : > { %p1030_p1 = pnand %p1029_p13, %p1028_p12  ;;  %p1035_p0 = por %p1034_p6, %p1033_p4 }
  0x44   : > { %p1031_p3 = pneg %p1030_p1 }
  0x46   : > { %p1036_p8 = pnand %p1035_p0, %p1031_p3 }
  0x48   : > { %1039 = shalt.err (!%p1036_p8)
}
  0x49   : > { %s1040_s5 = scalar_lea.vmem %s1309_s10, 768  ;;  %s1167_s9 = smov [#allocation6]  }
  0x4a   : > { %p1041_p7 = scmp.ne.s32.totalorder %s1309_s10, %s1040_s5  ;;  %s1045_s8 = sshll.u32 %s1167_s9, 4  ;;  %s1046_s8 = int_to_ptr.vmem [resolvable:$false] %s1045_s8 }
  0x4b   : > { %s1047_s22 = scalar_lea.vmem %s1046_s8, 1536  ;;  %p1048_p1 = scmp.lt.s32.totalorder %s1309_s10, %s1046_s8 }
  0x4c   : > { %p1043_p11 = pnand %p1041_p7, %p1029_p13  ;;  %p1049_p5 = scmp.lt.s32.totalorder %s1047_s22, %s1040_s5 }
  0x4e   : > { %p1044_p12 = pneg %p1043_p11  ;;  %p1050_p9 = por %p1049_p5, %p1048_p1 }
  0x50   : > { %p1051_p10 = pnand %p1050_p9, %p1044_p12 }
  0x52   : > { %1054 = shalt.err (!%p1051_p10)
}
  0x53   : > { %s1168_s25 = smov 128   ;;  %s1169_s8 = smov 8  }
  0x54   : > { %894 = dma.hbm_to_vmem [thread:$0]  (!%p1292_p2), %s1339_s4, 768, %s1309_s10, %s1344_s15, %s1168_s25, %s1168_s25, %s1169_s8  }
  0x55   : > { %s1546_s13 = sadd.s32 4294967295, %s1316_s18  ;;  %p1547_p8 = scmp.ne.s32.totalorder %s1544_s11, 0 }
  0x56   : > { %s1548_s23 = sadd.s32 4294967295, %s1322_s20  ;;  %p103_p11 = scmp.ne.s32.totalorder %s1139_s27, %s1135_s26 }
  0x57   : > { %s1588_s13 = smov (%p1547_p8, %s1546_s13), 0  ;;  %p753_p9 = scmp.gt.s32.totalorder %s1548_s23, 0 }
  0x58   : > { %s91_s16 = ssub.s32 %s1319_s19, %s1325_s21  ;;  %p1549_p0 = scmp.ne.s32.totalorder %s1538_s12, 0 }
  0x59   : > { %p1550_p5 = scmp.ne.s32.totalorder %s1135_s26, %s1131_s0  ;;  %s1552_s24 = smov %s1548_s23 }
  0x5a   : > { %s1590_s24 = smov (%p753_p9, %s1552_s24), 0  ;;  %s96_s10 = sadd.s32 1, %s1139_s27 }
  0x5b   : > { %p1380_p7 = por %p1550_p5, %p1549_p0  ;;  %s92_s4 = ssub.s32 %s1588_s13, %s1590_s24 }
  0x5c   : > { %s93_s18 = sor.u32 %s92_s4, %s91_s16  ;;  %p1553_p2 = scmp.eq.s32.totalorder %s1163_s7, 0 }
  0x5d   : > { %s1551_s28 = scalar_select %p1380_p7, 1, 0 }
  0x5e   : > { %p105_p10 = por %p103_p11, %p1553_p2  ;;  %p94_p13 = scmp.eq.s32.totalorder %s93_s18, 0 }
  0x5f   : > { %p1554_p3 = scmp.lt.s32.totalorder %s1163_s7, 3  ;;  %s215_s12 = sand.u32 1, %s1139_s27  }
  0x60   : > { %s882_s11 = scalar_select %p105_p10, [#allocation4], [#allocation11] }
  0x61   : > { %s1390_s15 = scalar_select %p94_p13, %s1139_s27, %s96_s10  }
  0x62   : > { %s883_s5 = scalar_select %p105_p10, %s1159_s6, 0 }
  0x63   : > { %s1592_s11 = smov (!%p1554_p3, %s882_s11), [#allocation14]  ;;  %p1555_p4 = pmov %p1554_p3 }
  0x64   : > { %s884_s0 = scalar_select %p105_p10, [#allocation5], [#allocation12] }
  0x65   : > { %s1594_s5 = smov (!%p1555_p4, %s883_s5), 0  ;;  %p1556_p6 = pmov %p1554_p3 }
  0x66   : > { %p1558_p1 = pmov %p1554_p3  ;;  %s220_s20 = sld [smem:[%s1592_s11 + %s1594_s5]] }
  0x67   : > { %p1400_p12 = pnand %p1556_p6, %p105_p10  ;;  %s761_s9 = sshll.u32 %s215_s12, 7 }
  0x68   : > { %s1596_s0 = smov (!%p1558_p1, %s884_s0), [#allocation15]  ;;  %s219_s25 = scalar_lea.vmem [#allocation8], %s761_s9 }
  0x69   : > { %s221_s21 = sld [smem:[%s1596_s0 + %s1594_s5]]  ;;  %s233_s8 = sshll.u32 %s219_s25, 4  ;;  %s1406_s8 = int_to_ptr.vmem [resolvable:$true] %s233_s8 }
  0x6a   : > { %s1413_s11 = scalar_lea.sflag [#allocation9], %s215_s12  ;;  %p1057_p11 = pneg %p1400_p12 }
  0x6c   : > { %s765_s13 = sshll.u32 %s220_s20, 5 }
  0x6f   : > { %s762_s22 = sadd.s32 4294967295, %s221_s21  ;;  %s1060_s21 = scalar_lea.hbm %s1523_s3, 4096 }
  0x70   : > { %p763_p8 = scmp.gt.s32.totalorder %s762_s22, 0 }
  0x72   : > { %s1598_s22 = smov (%p763_p8, %s762_s22), 0 }
  0x73   : > { %s764_s23 = sshll.u32 %s1598_s22, 5 }
  0x74   : > { %s230_s16 = sadd.s32 %s765_s13, %s764_s23 }
  0x75   : > { %s766_s24 = sshll.u32 %s230_s16, 6 }
  0x76   : > { %s1411_s18 = scalar_lea.hbm %s1523_s3, %s766_s24 }
  0x77   : > { %s1055_s5 = scalar_lea.hbm %s1411_s18, 2048  ;;  %p1061_p2 = scmp.lt.s32.totalorder %s1411_s18, %s1523_s3 }
  0x78   : > { %p1056_p9 = scmp.ne.s32.totalorder %s1411_s18, %s1055_s5  ;;  %p1062_p10 = scmp.lt.s32.totalorder %s1060_s21, %s1055_s5 }
  0x7a   : > { %p1058_p0 = pnand %p1057_p11, %p1056_p9  ;;  %p1063_p13 = por %p1062_p10, %p1061_p2 }
  0x7c   : > { %p1059_p5 = pneg %p1058_p0 }
  0x7e   : > { %p1064_p3 = pnand %p1063_p13, %p1059_p5 }
  0x80   : > { %1067 = shalt.err (!%p1064_p3)
}
  0x81   : > { %s1068_s12 = scalar_lea.vmem %s1406_s8, 2048  ;;  %s1170_s25 = smov [#allocation8]  }
  0x82   : > { %p1069_p4 = scmp.ne.s32.totalorder %s1406_s8, %s1068_s12  ;;  %s1073_s13 = sshll.u32 %s1170_s25, 4  ;;  %s1074_s13 = int_to_ptr.vmem [resolvable:$false] %s1073_s13 }
  0x83   : > { %s1075_s23 = scalar_lea.vmem %s1074_s13, 4096  ;;  %p1076_p8 = scmp.lt.s32.totalorder %s1406_s8, %s1074_s13 }
  0x84   : > { %p1071_p6 = pnand %p1069_p4, %p1057_p11  ;;  %p1077_p9 = scmp.lt.s32.totalorder %s1075_s23, %s1068_s12 }
  0x86   : > { %p1072_p1 = pneg %p1071_p6  ;;  %p1078_p0 = por %p1077_p9, %p1076_p8 }
  0x88   : > { %p1079_p7 = pnand %p1078_p0, %p1072_p1 }
  0x8a   : > { %1082 = shalt.err (!%p1079_p7)
}
  0x8b   : > { %s1171_s16 = smov 64   ;;  %s1172_s24 = smov 4  }
  0x8c   : > { %901 = dma.hbm_to_vmem [thread:$0]  (!%p1400_p12), %s1411_s18, 2048, %s1406_s8, %s1413_s11, %s1171_s16, %s1171_s16, %s1172_s24  }
  0x8d   : > { %p1559_p11 = scmp.ne.s32.totalorder %s1543_s17, 0 }
  0x8e   : > { %s255_s4 = sand.u32 (!%p1559_p11), 1, %s1147_s29   ;;  %p1560_p5 = scmp.ne.s32.totalorder (!%p1559_p11), %s1539_s14, 0 }
  0x8f   : > { %253 = sbr.rel (%p1559_p11) target bundleno = 424 (0x1a8), region = 32  ;;  %s256_s5 = scalar_lea.sflag (!%p1559_p11), [#allocation7], %s255_s4 }
  0x90   : > { %s878_s10 = smul.u32 (!%p1559_p11), 48, %s255_s4 }
  0x92   : > { %s1437_s0 = scalar_lea.vmem (!%p1559_p11), [#allocation6], %s878_s10 }
  0x94   : > { %1122 = dma.done.wait (%p1560_p5), %s256_s5, 768  }
  0x95   : > { %1124 = vsyncadd (%p1560_p5), %s256_s5, 4294966528  ;;  %s264_s20 = sand.u32 1, %s1135_s26   ;;  %p1561_p7 = scmp.ne.s32.totalorder %s1551_s28, 0 }
  0x96   : > { %s768_s19 = sshll.u32 %s264_s20, 7  ;;  %s265_s8 = scalar_lea.sflag [#allocation9], %s264_s20 }
  0x97   : > { %s1444_s18 = scalar_lea.vmem [#allocation8], %s768_s19 }
  0x98   : > { %1126 = dma.done.wait (%p1561_p7), %s265_s8, 2048  }
  0x99   : > { %1128 = vsyncadd (%p1561_p7), %s265_s8, 4294965248  ;;  %s317_s17 = smul.u32 6, %s1155_s1  ;;  %s312_s11 = sld [smem:[#allocation4 + %s1155_s1]]  ;;  %v1173_v0 = vmov 0.0  }
  0x9a   : > { %328 = vst [vmem:[#allocation2 + $0x28] sm:$0xff] %v1173_v0  ;;  %329 = vst [vmem:[#allocation2 + $0x10] sm:$0xff] %v1173_v0  ;;  %s334_s14 = sld [smem:[#allocation5 + %s1155_s1]] }
  0x9b   : > { %330 = vst [vmem:[#allocation2 + $0x8] sm:$0xff] %v1173_v0  ;;  %331 = vst [vmem:[#allocation2] sm:$0xff] %v1173_v0  ;;  %p318_p12 = scmp.lt.s32.totalorder %s317_s17, 17  ;;  %s1562_s22 = sld [smem:[#allocation22_spill]] }
  0x9c   : > { %332 = vst [vmem:[#allocation2 + $0x18] sm:$0xff] %v1173_v0  ;;  %333 = vst [vmem:[#allocation2 + $0x20] sm:$0xff] %v1173_v0  ;;  %s1563_s23 = sld [smem:[#allocation21_spill]] }
  0x9d   : > { %s1600_s17 = smov (!%p318_p12, %s317_s17), 17 }
  0x9e   : > { %s769_s21 = sshll.u32 %s1600_s17, 2 }
  0x9f   : > { %p313_p2 = scmp.lt.s32.totalorder %s312_s11, 1 }
  0xa0   : > { %p771_p10 = scmp.le.s32.totalorder %s334_s14, 0 }
  0xa1   : > { %s1456_s12 = scalar_lea.vmem %s1562_s22, %s769_s21  ;;  %s1602_s11 = smov (!%p313_p2, %s312_s11), 1 }
  0xa2   : > { %s315_s16 = scalar_lea.vmem %s1563_s23, %s1602_s11  ;;  %338 = sbr.rel (%p771_p10) target bundleno = 412 (0x19c), region = 48 }
  0xa7   : > { %v982_v1 = vld [vmem:[%s1444_s18 + $0x78] sm:$0xff]   ;;  %v984_v3 = vld [vmem:[%s1444_s18 + $0x70] sm:$0xff]   ;;  %v986_v5 = vld [vmem:[%s1444_s18 + $0x68] sm:$0xff]  }
  0xa8   : > { %v983_v2 = vld [vmem:[%s1444_s18 + $0x38] sm:$0xff]   ;;  %861 = vmatprep.subr.bf16.mxu1 %v982_v1  ;;  %827 = vmatprep.subr.bf16.mxu0 %v982_v1  ;;  %v985_v4 = vld [vmem:[%s1444_s18 + $0x30] sm:$0xff]   ;;  %v987_v6 = vld [vmem:[%s1444_s18 + $0x28] sm:$0xff]  }
  0xa9   : > { %869 = vmatpush3.bf16.msra.mxu1 %v983_v2  ;;  %828 = vmatpush3.bf16.msra.mxu0 %v983_v2  ;;  %v988_v7 = vld [vmem:[%s1444_s18 + $0x60] sm:$0xff]   ;;  %v990_v9 = vld [vmem:[%s1444_s18 + $0x58] sm:$0xff]   ;;  %v992_v11 = vld [vmem:[%s1444_s18 + $0x50] sm:$0xff]  }
  0xaa   : > { %862 = vmatprep.subr.bf16.mxu1 %v984_v3  ;;  %829 = vmatprep.subr.bf16.mxu0 %v984_v3  ;;  %v989_v8 = vld [vmem:[%s1444_s18 + $0x20] sm:$0xff]   ;;  %v991_v10 = vld [vmem:[%s1444_s18 + $0x18] sm:$0xff]   ;;  %v993_v14 = vld [vmem:[%s1444_s18 + $0x10] sm:$0xff]  }
  0xab   : > { %v1000_v12 = vld [vmem:[%s1437_s0 + $0x14] ss:$8 sps:$4 sm:$0xff]   ;;  %v1003_v13 = vld [vmem:[%s1437_s0 + $0x4] ss:$8 sps:$4 sm:$0xff]   ;;  %v998_v19 = vld [vmem:[%s1437_s0 + $0x10] ss:$8 sps:$4 sm:$0xff]  }
  0xac   : > { %v994_v15 = vld [vmem:[%s1444_s18 + $0x48] sm:$0xff]   ;;  %549 = vmatprep.mubr.bf16.mxu1 %v1000_v12  ;;  %541 = vmatprep.mubr.bf16.mxu0 %v1003_v13  ;;  %v996_v17 = vld [vmem:[%s1444_s18 + $0x40] sm:$0xff]   ;;  %v341_v25 = vld [vmem:[#allocation2 + $0x8] sm:$0xff] }
  0xad   : > { %870 = vmatpush3.bf16.msra.mxu1 %v985_v4  ;;  %830 = vmatpush3.bf16.msra.mxu0 %v985_v4  ;;  %v995_v16 = vld [vmem:[%s1444_s18 + $0x8] sm:$0xff]   ;;  %v997_v18 = vld [vmem:[%s1444_s18] sm:$0xff]   ;;  %v339_v27 = vld [vmem:[#allocation2 + $0x28] sm:$0xff] }
  0xae   : > { %863 = vmatprep.subr.bf16.mxu1 %v986_v5  ;;  %831 = vmatprep.subr.bf16.mxu0 %v986_v5  ;;  %v1001_v20 = vld [vmem:[%s1437_s0] ss:$8 sps:$4 sm:$0xff]   ;;  %v1004_v21 = vld [vmem:[%s1437_s0 + $0x24] ss:$8 sps:$4 sm:$0xff]  }
  0xaf   : > { %v1006_v22 = vld [vmem:[%s1437_s0 + $0x20] ss:$8 sps:$4 sm:$0xff]  }
  0xb0   : > { %v342_v35 = vld [vmem:[#allocation2] sm:$0xff]  ;;  %v340_v37 = vld [vmem:[#allocation2 + $0x10] sm:$0xff]  ;;  %v343_v44 = vld [vmem:[#allocation2 + $0x18] sm:$0xff] }
  0xb1   : > { %871 = vmatpush3.bf16.msra.mxu1 %v987_v6  ;;  %832 = vmatpush3.bf16.msra.mxu0 %v987_v6  ;;  %v344_v49 = vld [vmem:[#allocation2 + $0x20] sm:$0xff] }
  0xb2   : > { %864 = vmatprep.subr.bf16.mxu1 %v988_v7  ;;  %833 = vmatprep.subr.bf16.mxu0 %v988_v7 }
  0xb5   : > { %872 = vmatpush3.bf16.msra.mxu1 %v989_v8  ;;  %834 = vmatpush3.bf16.msra.mxu0 %v989_v8 }
  0xb6   : > { %865 = vmatprep.subr.bf16.mxu1 %v990_v9  ;;  %835 = vmatprep.subr.bf16.mxu0 %v990_v9 }
  0xb9   : > { %873 = vmatpush3.bf16.msra.mxu1 %v991_v10  ;;  %836 = vmatpush3.bf16.msra.mxu0 %v991_v10 }
  0xba   : > { %866 = vmatprep.subr.bf16.mxu1 %v992_v11  ;;  %837 = vmatprep.subr.bf16.mxu0 %v992_v11 }
  0xbd   : > { %874 = vmatpush3.bf16.msra.mxu1 %v993_v14  ;;  %838 = vmatpush3.bf16.msra.mxu0 %v993_v14 }
  0xbe   : > { %867 = vmatprep.subr.bf16.mxu1 %v994_v15  ;;  %839 = vmatprep.subr.bf16.mxu0 %v994_v15 }
  0xc1   : > { %875 = vmatpush3.bf16.msra.mxu1 %v995_v16  ;;  %840 = vmatpush3.bf16.msra.mxu0 %v995_v16 }
  0xc2   : > { %868 = vmatprep.subr.bf16.mxu1 %v996_v17  ;;  %841 = vmatprep.subr.bf16.mxu0 %v996_v17 }
  0xc5   : > { %876 = vmatpush3.bf16.msra.mxu1 %v997_v18  ;;  %842 = vmatpush3.bf16.msra.mxu0 %v997_v18 }
  0xc8   : > { %550 = vmatmul.mubr.bf16.vlgmr.msra.gmra.mxu1 %v998_v19  ;;  %542 = vmatmul.mubr.bf16.vlgmr.msra.gmra.mxu0 %v1001_v20 }
  0xc9   : > { %557 = vmatprep.mubr.bf16.mxu1 %v1004_v21 }
  0xd0   : > { %558 = vmatmul.mubr.bf16.gmra.mxu1 %v1006_v22 }
 0x188   : > { %v849_v23 = vpop.f32.mrf.mxu1  ;;  %v843_v24 = vpop.f32.mrf.mxu0 }
 0x18a   : > { %v850_v26 = vpop.f32.mrf.mxu1  ;;  %v844_v28 = vpop.f32.mrf.mxu0 }
 0x18b   : > { %v851_v29 = vadd.f32 %v850_v26, %v849_v23  ;;  %v845_v30 = vadd.f32 %v844_v28, %v843_v24 }
 0x18c   : > { %v852_v31 = vpop.f32.mrf.mxu1  ;;  %v846_v32 = vpop.f32.mrf.mxu0 }
 0x18d   : > { %v568_v33 = vadd.f32 %v851_v29, %v341_v25  ;;  %v566_v34 = vadd.f32 %v845_v30, %v339_v27 }
 0x18e   : > { %v853_v36 = vpop.f32.mrf.mxu1  ;;  %v847_v38 = vpop.f32.mrf.mxu0 }
 0x18f   : > { %574 = vst [vmem:[#allocation2 + $0x8] sm:$0xff] %v568_v33  ;;  %572 = vst [vmem:[#allocation2 + $0x28] sm:$0xff] %v566_v34  ;;  %v854_v39 = vadd.f32 %v853_v36, %v852_v31  ;;  %v848_v40 = vadd.f32 %v847_v38, %v846_v32 }
 0x190   : > { %v855_v41 = vpop.f32.mrf.mxu1 }
 0x191   : > { %v569_v42 = vadd.f32 %v854_v39, %v342_v35  ;;  %v567_v43 = vadd.f32 %v848_v40, %v340_v37 }
 0x192   : > { %v856_v45 = vpop.f32.mrf.mxu1 }
 0x193   : > { %575 = vst [vmem:[#allocation2] sm:$0xff] %v569_v42  ;;  %573 = vst [vmem:[#allocation2 + $0x10] sm:$0xff] %v567_v43  ;;  %v857_v46 = vadd.f32 %v856_v45, %v855_v41 }
 0x194   : > { %v858_v47 = vpop.f32.mrf.mxu1 }
 0x195   : > { %v570_v48 = vadd.f32 %v857_v46, %v343_v44 }
 0x196   : > { %v859_v50 = vpop.f32.mrf.mxu1 }
 0x197   : > { %576 = vst [vmem:[#allocation2 + $0x18] sm:$0xff] %v570_v48  ;;  %v860_v51 = vadd.f32 %v859_v50, %v858_v47 }
 0x199   : > { %v571_v52 = vadd.f32 %v860_v51, %v344_v49 }
 0x19b   : > { %577 = vst [vmem:[#allocation2 + $0x20] sm:$0xff] %v571_v52 }
 0x19c PF: > { %v581_v53 = vld [vmem:[#allocation2 + $0x28] sm:$0xff]  ;;  %v582_v54 = vld [vmem:[#allocation2 + $0x10] sm:$0xff]  ;;  %v794_v55 = vld [vmem:[%s315_s16] ss:$0 sm:$0xff] }
 0x19d   : > { %v594_v56 = vadd.f32 %v794_v55, %v581_v53  ;;  %v595_v57 = vadd.f32 %v794_v55, %v582_v54  ;;  %v583_v58 = vld [vmem:[#allocation2 + $0x8] sm:$0xff]  ;;  %v584_v59 = vld [vmem:[#allocation2] sm:$0xff] }
 0x19e   : > { %v585_v60 = vld [vmem:[#allocation2 + $0x18] sm:$0xff]  ;;  %v596_v61 = vadd.f32 %v794_v55, %v583_v58  ;;  %v597_v62 = vadd.f32 %v794_v55, %v584_v59 }
 0x19f   : > { %v598_v0 = vadd.f32 %v794_v55, %v585_v60  ;;  %v813_v1 = vpack.c.bf16 %v595_v57, %v594_v56 }
 0x1a0   : > { %v818_v3 = vpack.c.bf16 %v597_v62, %v596_v61 }
 0x1a1   : > { %814 = vst [vmem:[%s1456_s12] sm:$0xff] %v813_v1  }
 0x1a2   : > { %v586_v63 = vld [vmem:[#allocation2 + $0x20] sm:$0xff]  ;;  %825 = vst [vmem:[%s1456_s12 + $0x8] sm:$0xff] %v818_v3  }
 0x1a3   : > { %v599_v2 = vadd.f32 %v794_v55, %v586_v63 }
 0x1a5   : > { %v823_v4 = vpack.c.bf16 %v599_v2, %v598_v0 }
 0x1a7   : > { %826 = vst [vmem:[%s1456_s12 + $0x10] sm:$0xff] %v823_v4  }
 0x1a8 PF: > { %s29_s7 = sadd.s32 1, %s1163_s7   ;;  %s1565_s10 = sld [smem:[#allocation20_spill]] }
 0x1a9   : > { %p26_p13 = scmp.ge.s32.totalorder %s29_s7, 5   ;;  %s1566_s5 = sld [smem:[#allocation19_spill]] }
 0x1aa   : > { %s1567_s0 = smov %s1135_s26  ;;  %s1568_s26 = smov %s1139_s27 }
 0x1ab   : > { %s1569_s27 = smov %s1390_s15  ;;  %s1570_s28 = smov %s1147_s29 }
 0x1ac   : > { %s1571_s29 = smov %s1151_s30  ;;  %s1573_s1 = smov %s1159_s6 }
 0x1ad   :  { %28 = sbr.rel (!%p26_p13) target bundleno = 25 (0x19), region = 100 }
 0x1ae   : > { %s1572_s30 = smov %s1565_s10 }
 0x1af   : > { %s1574_s6 = smov %s1566_s5 }
 0x1b2   :  { %652 = vsyncpa [#allocation7], 1 }
 0x1b3   :  { %654 = vsyncpa [#allocation7 + $0x1], 1 }
 0x1b4   :  { %655 = vsyncpa [#allocation9], 1 }
 0x1b5   :  { %657 = vsyncpa [#allocation9 + $0x1], 1 }

</bundles_post_ra>
